<compile_context>
chip_gen: v5e
topology: v5e:2x2
jax: 0.10.0
libtpu: 0.0.40
codegen_flags: <defaults>
</compile_context>

<pallas_src>
import math

import jax
import jax.numpy as jnp
from jax.experimental import pallas as pl
from jax.experimental.pallas import tpu as pltpu


def _round_up(x, m):
    return pl.cdiv(x, m) * m


# ----------------------------- Pallas GEMM kernel -----------------------------
# K (= C*kh*kw) is small for convs, so it fits in a single full-extent block:
# no reduction grid axis, no accumulator scratch, one MXU dot per output tile.

def _wt_col_kernel(w_ref, col_ref, o_ref):
    # w_ref:   (out_c_p, K_p) -- whole (padded) weight, pinned in VMEM
    # col_ref: (K_p,    tm)   -- one lane-dense tile of the im2col matrix
    # o_ref:   (out_c_p, tm)  -- f32 output tile, M on the lane axis
    o_ref[...] = jnp.dot(w_ref[...], col_ref[...],
                         preferred_element_type=jnp.float32)


def _gemm_wt_col(w_t_p, col_p, *, tm):
    """w_t_p: [out_c_p, K_p], col_p: [K_p, Mp] -> [out_c_p, Mp] float32."""
    out_c_p, K_p = w_t_p.shape
    K_p2, Mp = col_p.shape
    assert K_p == K_p2 and Mp % tm == 0
    elt = jnp.dtype(w_t_p.dtype).itemsize
    cost = pl.CostEstimate(
        flops=2 * out_c_p * K_p * Mp,
        transcendentals=0,
        bytes_accessed=out_c_p * K_p * elt + K_p * Mp * elt + out_c_p * Mp * 4,
    )
    return pl.pallas_call(
        _wt_col_kernel,
        out_shape=jax.ShapeDtypeStruct((out_c_p, Mp), jnp.float32),
        grid_spec=pltpu.PrefetchScalarGridSpec(
            num_scalar_prefetch=0,
            grid=(Mp // tm,),
            in_specs=[
                # Weight: constant block index -> DMA'd into VMEM once, reused
                # for every grid step.
                pl.BlockSpec((out_c_p, K_p), lambda i: (0, 0)),
                pl.BlockSpec((K_p, tm), lambda i: (0, i)),
            ],
            out_specs=pl.BlockSpec((out_c_p, tm), lambda i: (0, i)),
        ),
        compiler_params=pltpu.CompilerParams(
            dimension_semantics=("parallel",),
            vmem_limit_bytes=32 * 1024 * 1024,
        ),
        cost_estimate=cost,
    )(w_t_p, col_p)


# ------------------------------ patch extraction ------------------------------

def _im2col_t(x, k_h, k_w, stride, padding, out_h, out_w):
    """Returns col [C*kh*kw, N*oh*ow] == x_tile^T of the PyTorch forward."""
    N, C, H, W = x.shape
    if padding == 0:
        # Fast path: strided slices (no index tensor, no gather). Identical to
        # the as_strided extraction when padding == 0.
        patches = []
        for i in range(k_h):
            for j in range(k_w):
                h_end = i + (out_h - 1) * stride + 1
                w_end = j + (out_w - 1) * stride + 1
                patches.append(x[:, :, i:h_end:stride, j:w_end:stride])
        col = jnp.stack(patches, axis=0)                   # (kh*kw, N, C, oh, ow)
        col = col.reshape(k_h, k_w, N, C, out_h, out_w)
        col = col.transpose(3, 0, 1, 2, 4, 5)              # (C, kh, kw, N, oh, ow)
        return col.reshape(C * k_h * k_w, N * out_h * out_w)
    # padding > 0: reproduce the PyTorch as_strided quirk exactly (strides
    # computed from the *unpadded* shape, applied to the padded buffer).
    img = jnp.pad(x, ((0, 0), (0, 0), (padding, padding), (padding, padding)))
    s = (C * H * W, H * W, W * stride, stride, W * stride, stride)
    c_i = jnp.arange(C)[:, None, None, None, None, None] * s[1]
    kh_i = jnp.arange(k_h)[None, :, None, None, None, None] * s[4]
    kw_i = jnp.arange(k_w)[None, None, :, None, None, None] * s[5]
    n_i = jnp.arange(N)[None, None, None, :, None, None] * s[0]
    oh_i = jnp.arange(out_h)[None, None, None, None, :, None] * s[2]
    ow_i = jnp.arange(out_w)[None, None, None, None, None, :] * s[3]
    flat = c_i + kh_i + kw_i + n_i + oh_i + ow_i           # (C, kh, kw, N, oh, ow)
    col = img.reshape(-1)[flat]
    return col.reshape(C * k_h * k_w, N * out_h * out_w)


def _pick_tm(M):
    # Lane tile for the M axis. Keep >=2 grid steps when possible so both v7x
    # TensorCores get work; grow the tile for large M to amortize per-step cost.
    if M <= 256:
        return 128
    if M <= 4096:
        return 256
    return 512


def _make_forward(k_h, k_w, stride, padding, out_c, out_c_p, K, K_p, compute_dtype):
    def forward(x, w_t_p):
        N, C, H, W = x.shape
        out_h = (H + 2 * padding - k_h) // stride + 1
        out_w = (W + 2 * padding - k_w) // stride + 1
        M = N * out_h * out_w

        xc = x.astype(compute_dtype)
        # TODO(synk): fully fuse patch extraction into the kernel (keep x in HBM
        # via memory_space=pl.ANY and DMA strided rows per (kh, kw) step) so the
        # col matrix is never materialized in HBM.
        col = _im2col_t(xc, k_h, k_w, stride, padding, out_h, out_w)   # (K, M)
        assert col.shape[0] == K

        tm = _pick_tm(M)
        Mp = _round_up(M, tm)
        col_p = jnp.pad(col, ((0, K_p - K), (0, Mp - M)))

        out_t = _gemm_wt_col(w_t_p, col_p, tm=tm)                      # (out_c_p, Mp)
        out_t = out_t[:out_c, :M]
        # Channel-major result -> NCHW; matches
        # conv_out.reshape(N,-1,out_c).permute(0,2,1).reshape(N,out_c,out_h,-1).
        return out_t.reshape(out_c, N, out_h, out_w).transpose(1, 0, 2, 3)

    return jax.jit(forward)


# ------------------------------- module wrapper -------------------------------

class DenseConv2dPallas:
    def __init__(self, in_c, out_c, kernel_size, stride=1, padding=0, dilation=1,
                 groups=1, bias=True, *, key=None, compute_dtype=jnp.bfloat16):
        self.in_channels = in_c
        self.out_channels = out_c
        self.kernel_size = kernel_size
        self.stride = stride
        self.padding = padding
        self.dilation = dilation        # stored but unused by forward (as in the original)
        self.groups = groups            # stored but unused by forward (as in the original)
        self.compute_dtype = compute_dtype

        if key is None:
            key = jax.random.PRNGKey(0)
        wkey, bkey = jax.random.split(key)
        k_h, k_w = kernel_size
        fan_in = (in_c // groups) * k_h * k_w
        bound = 1.0 / math.sqrt(fan_in)
        # kaiming_uniform_(a=sqrt(5)) == U(-1/sqrt(fan_in), 1/sqrt(fan_in))
        self.weight = jax.random.uniform(
            wkey, (out_c, in_c // groups, k_h, k_w),
            dtype=jnp.float32, minval=-bound, maxval=bound)
        # NOTE: bias is defined by the module but never added in forward().
        self.bias = (jax.random.uniform(bkey, (out_c,), dtype=jnp.float32,
                                        minval=-bound, maxval=bound)
                     if bias else None)

        # Pre-transform the weight ONCE (not per call): raw-memory reshape to
        # (K, out_c) exactly like torch's weight.reshape(-1, out_c), transpose
        # so the GEMM runs as W^T @ col, pad to sublane multiples, cast for MXU.
        K = (in_c // groups) * k_h * k_w
        K_p = _round_up(K, 8)
        out_c_p = _round_up(out_c, 8)
        w_t = self.weight.reshape(-1, out_c).T                         # (out_c, K)
        self._w_t_p = jnp.pad(
            w_t, ((0, out_c_p - out_c), (0, K_p - K))).astype(compute_dtype)

        self._fwd = _make_forward(k_h, k_w, stride, padding, out_c, out_c_p,
                                  K, K_p, compute_dtype)

    def __call__(self, x):
        return self._fwd(x, self._w_t_p)


# ----------------------------------- main -----------------------------------

if __name__ == "__main__":
    key = jax.random.PRNGKey(0)
    xkey, pkey = jax.random.split(key)

    N, C, H, W = 2, 4, 16, 16
    out_c = 8
    module = DenseConv2dPallas(C, out_c, kernel_size=(3, 3), stride=1,
                               padding=0, bias=True, key=pkey)

    x = jax.random.normal(xkey, (N, C, H, W), dtype=jnp.float32)

    out = jax.block_until_ready(module(x))

    # ---------- reference check (same semantics as the PyTorch forward) ----------
    out_h = (H + 2 * 0 - 3) // 1 + 1
    out_w = (W + 2 * 0 - 3) // 1 + 1
    col_ref = _im2col_t(x, 3, 3, 1, 0, out_h, out_w)        # (K, M)
    x_tile = col_ref.T                                      # (M, K)
    w_tile = module.weight.reshape(-1, out_c)               # (K, out_c)
    cd = module.compute_dtype

    def to_nchw(mat):
        return (mat.reshape(N, -1, out_c).transpose(0, 2, 1)
                   .reshape(N, out_c, out_h, -1))

    # Tight check: f32 GEMM of the bf16-rounded operands (what the MXU computes).
    ref_tight = to_nchw(jnp.matmul(x_tile.astype(cd).astype(jnp.float32),
                                   w_tile.astype(cd).astype(jnp.float32),
                                   precision=jax.lax.Precision.HIGHEST))
    # Loose check: full-f32 semantics of the original module.
    ref_f32 = to_nchw(jnp.matmul(x_tile, w_tile,
                                 precision=jax.lax.Precision.HIGHEST))

    assert out.shape == (N, out_c, out_h, out_w), out.shape
    assert jnp.allclose(out, ref_tight, atol=2e-3, rtol=2e-3), \
        float(jnp.max(jnp.abs(out - ref_tight)))
    assert jnp.allclose(out, ref_f32, atol=3e-2, rtol=3e-2), \
        float(jnp.max(jnp.abs(out - ref_f32)))
    print("KERNEL_OK")
</pallas_src>

<mosaic_0001>
module attributes {stable_mosaic.version = 11 : i64} {
  func.func @_wt_col_kernel(%arg0: i32, %arg1: memref<8x40xbf16, #tpu.memory_space<vmem>>, %arg2: memref<40x256xbf16, #tpu.memory_space<vmem>>, %arg3: memref<8x256xf32, #tpu.memory_space<vmem>>) attributes {dimension_semantics = [#tpu.dimension_semantics<parallel>], iteration_bounds = array<i64: 2>, scalar_prefetch = 0 : i64, scratch_operands = 0 : i64, tpu.core_type = #tpu.core_type<tc>, window_params = [{pipeline_mode = #tpu.pipeline_mode<synchronous>, transform_indices = @transform_0, window_bounds = array<i64: 8, 40>}, {transform_indices = @transform_1, window_bounds = array<i64: 40, 256>}, {transform_indices = @transform_2, window_bounds = array<i64: 8, 256>}]} {
    %c0 = arith.constant 0 : index
    %c0_0 = arith.constant 0 : index
    %0 = vector.load %arg1[%c0, %c0_0] : memref<8x40xbf16, #tpu.memory_space<vmem>>, vector<8x40xbf16>
    %c0_1 = arith.constant 0 : index
    %c0_2 = arith.constant 0 : index
    %1 = vector.load %arg2[%c0_1, %c0_2] : memref<40x256xbf16, #tpu.memory_space<vmem>>, vector<40x256xbf16>
    %cst = arith.constant dense<0.000000e+00> : vector<8x256xf32>
    %2 = tpu.matmul %0, %1, %cst {dimension_numbers = #tpu.dot_dimension_numbers<[1], [0], [0], [1], [0, 0, 1, 1], [], []>} : vector<8x40xbf16>, vector<40x256xbf16>, vector<8x256xf32> -> vector<8x256xf32>
    %c0_3 = arith.constant 0 : index
    %c0_4 = arith.constant 0 : index
    %3 = vector.load %arg3[%c0_3, %c0_4] : memref<8x256xf32, #tpu.memory_space<vmem>>, vector<8x256xf32>
    tpu.vector_store %arg3[%c0_3, %c0_4], %2 {strides = array<i32>} : memref<8x256xf32, #tpu.memory_space<vmem>>, vector<8x256xf32>,
    return
  }
  func.func @transform_0(%arg0: i32) -> (i32, i32) {
    %c0_i32 = arith.constant 0 : i32
    %c0_i32_0 = arith.constant 0 : i32
    %c0_i32_1 = arith.constant 0 : i32
    return %c0_i32, %c0_i32_0 : i32, i32
  }
  func.func @transform_1(%arg0: i32) -> (i32, i32) {
    %c0_i32 = arith.constant 0 : i32
    %c0_i32_0 = arith.constant 0 : i32
    return %c0_i32, %arg0 : i32, i32
  }
  func.func @transform_2(%arg0: i32) -> (i32, i32) {
    %c0_i32 = arith.constant 0 : i32
    %c0_i32_0 = arith.constant 0 : i32
    return %c0_i32, %arg0 : i32, i32
  }
}

</mosaic_0001>

<bundles_post_ra>
// kernel: forward.1
= control target key start
LH: loop header
LB: loop body
LE: loop exit
PB: predicated region body
PF: predicated region fallthrough
CT: control target
= control target key end

     0   :  { %s430_s9 = smov 0   ;;  %s432_s10 = smov 0   ;;  %s485_s0 = inlined_call_operand.vmem [shape: bf16[8,40], index: 0, kind: input, shape index: {}]   ;;  %s486_s1 = inlined_call_operand.vmem [shape: bf16[40,512], index: 1, kind: input, shape index: {}]   ;;  %s487_s2 = inlined_call_operand.vmem [shape: f32[8,512], index: 2, kind: output, shape index: {}]  }
   0x1   :  { %s434_s11 = smov 0  }
   0x2 LB: > { %s331_s12 = sadd.s32 4294967295, %s413_s11   ;;  %s447_s13 = sadd.s32 1, %s413_s11   ;;  %s413_s11 = sphi %s434_s11, %s490_s11   ;;  %s409_s10 = sphi %s432_s10, %s489_s10   ;;  %s405_s9 = sphi %s430_s9, %s488_s9  }
   0x3   : > { %s37_s14 = ssub.s32 %s413_s11, %s447_s13  ;;  %s40_s15 = sadd.s32 1, %s409_s10 }
   0x4   : > { %p38_p0 = scmp.eq.s32.totalorder %s37_s14, 0  ;;  %p47_p1 = scmp.ne.s32.totalorder %s409_s10, %s405_s9 }
   0x5   : > { %p48_p2 = scmp.eq.s32.totalorder %s413_s11, 0  ;;  %p334_p4 = scmp.ge.s32.totalorder %s413_s11, 2 }
   0x6   : > { %s456_s16 = scalar_select %p38_p0, %s409_s10, %s40_s15  }
   0x7   : > { %p49_p3 = por %p48_p2, %p47_p1  ;;  %102 = sbr.rel (%p334_p4) target bundleno = 21 (0x15), region = 20 }
   0xc   : > { %105 = sbr.rel (!%p49_p3) target bundleno = 21 (0x15), region = 24  ;;  %s107_s17 = sand.u32 (%p49_p3), 1, %s409_s10  }
   0xd   : > { %s360_s18 = sshll.u32 (%p49_p3), %s413_s11, 3  ;;  %s365_s19 = smul.u32 (%p49_p3), 40, %s107_s17 }
   0xe   : > { %s112_s22 = scalar_lea.vmem (%p49_p3), %s486_s1, %s360_s18 }
   0xf   : > { %v149_v0 = vld [vmem:[%s112_s22] sm:$0xff] (%p49_p3)  ;;  %v151_v1 = vld [vmem:[%s112_s22 + $0x10] sm:$0xff] (%p49_p3)  ;;  %s109_s23 = scalar_lea.vmem (%p49_p3), [#allocation2], %s365_s19 }
  0x10   : > { %v153_v2 = vld [vmem:[%s112_s22 + $0x20] sm:$0xff] (%p49_p3)  ;;  %150 = vst [vmem:[%s109_s23] sm:$0xff] (%p49_p3), %v149_v0  ;;  %v155_v3 = vld [vmem:[%s112_s22 + $0x30] sm:$0xff] (%p49_p3) }
  0x11   : > { %152 = vst [vmem:[%s109_s23 + $0x8] sm:$0xff] %v151_v1  ;;  %v157_v4 = vld [vmem:[%s112_s22 + $0x40] sm:$0xff] }
  0x12   : > { %154 = vst [vmem:[%s109_s23 + $0x10] sm:$0xff] %v153_v2 }
  0x13   : > { %156 = vst [vmem:[%s109_s23 + $0x18] sm:$0xff] %v155_v3 }
  0x14   : > { %158 = vst [vmem:[%s109_s23 + $0x20] sm:$0xff] %v157_v4 }
  0x15 PF: > { %p337_p5 = scmp.ge.s32.totalorder %s413_s11, 1  ;;  %p163_p6 = scmp.lt.s32.totalorder %s413_s11, 3 }
  0x17   : > { %p164_p7 = pnand %p337_p5, %p163_p6 }
  0x18   : > { %s170_s24 = sand.u32 (!%p164_p7), 1, %s405_s9   ;;  %s338_s29 = sshll.u32 (!%p164_p7), %s331_s12, 1 }
  0x19   : > { %167 = sbr.rel (%p164_p7) target bundleno = 181 (0xb5), region = 62  ;;  %p193_p8 = scmp.lt.s32.totalorder (!%p164_p7), %s338_s29, 3 }
  0x1a   : > { %s366_s25 = smul.u32 (!%p164_p7), 40, %s170_s24 }
  0x1c   : > { %s172_s26 = scalar_lea.vmem (!%p164_p7), [#allocation2], %s366_s25 }
  0x1e   : > { %v204_v5 = vld [vmem:[%s172_s26 + $0x20] sm:$0xff]  ;;  %vm234_vm0 = vcmask 1043456   ;;  %v350_v8 = vld [vmem:[%s172_s26 + $0x10] sm:$0xf]  ;;  %v364_v11 = vld [vmem:[%s172_s26 + $0x14] sm:$0xf0] }
  0x1f   : > { %v218_v6 = vunpack.c.l.b16 %v204_v5  ;;  %v219_v7 = vunpack.c.h.b16 %v204_v5  ;;  %v363_v12 = vld [vmem:[%s172_s26 + $0x14] sm:$0xf]  ;;  %v352_v13 = vld [vmem:[%s172_s26 + $0x18] sm:$0xf0]  ;;  %v351_v16 = vor.u32 %v364_v11, %v350_v8  ;;  %v342_v18 = vld [vmem:[%s172_s26] sm:$0xf] }
  0x20   : > { %v355_v17 = vor.u32 %v363_v12, %v352_v13  ;;  %v362_v19 = vld [vmem:[%s172_s26 + $0x4] sm:$0xf0]  ;;  %v361_v20 = vld [vmem:[%s172_s26 + $0x4] sm:$0xf]  ;;  %v344_v21 = vld [vmem:[%s172_s26 + $0x8] sm:$0xf0] }
  0x21   : > { %v224_v9 = vpack.c.b16 %v218_v6, %v218_v6  ;;  %v225_v10 = vpack.c.b16 %v219_v7, %v219_v7  ;;  %v343_v22 = vor.u32 %v362_v19, %v342_v18  ;;  %v347_v23 = vor.u32 %v361_v20, %v344_v21  ;;  %v199_v24 = vld [vmem:[%s485_s0] sm:$0xf]  ;;  %s492_s29 = smov (!%p193_p8, %s338_s29), 3 }
  0x22   : > { %vm230_vm1 = vcmask 326656   ;;  %s339_s30 = sshll.u32 %s492_s29, 3 }
  0x23   : > { %v236_v14 = vsel %vm234_vm0, %v224_v9, 0  ;;  %v239_v15 = vsel %vm234_vm0, %v225_v10, 0  ;;  %s196_s5 = scalar_lea.vmem %s487_s2, %s339_s30 }
  0x24   : > { %246 = vmatpush.bf16.msra.mxu0 %v236_v14  ;;  %259 = vmatpush.bf16.msra.mxu1 %v239_v15 }
  0x28   : > { %247 = vmatpush.bf16.msra.mxu0 %v351_v16  ;;  %260 = vmatpush.bf16.msra.mxu1 %v355_v17 }
  0x2c   : > { %248 = vmatpush.bf16.msra.mxu0 %v343_v22  ;;  %261 = vmatpush.bf16.msra.mxu1 %v347_v23 }
  0x2f   : > { %356 = vmatmul.msk.bf16.vlgmr.msra.gmra.mxu0 %vm230_vm1, %v199_v24  ;;  %357 = vmatmul.msk.bf16.vlgmr.msra.gmra.mxu1 %vm230_vm1, %v199_v24 }
  0xac   : > { %v250_v25 = vpop.f32.mrf.mxu0  ;;  %v263_v26 = vpop.f32.mrf.mxu1 }
  0xad   : > { %267 = vst [vmem:[%s196_s5] sm:$0xff] %v250_v25 }
  0xae   : > { %268 = vst [vmem:[%s196_s5 + $0x8] sm:$0xff] %v263_v26 }
  0xb4   : > { %v252_v27 = vpop.f32.mrf.mxu0  ;;  %v265_v28 = vpop.f32.mrf.mxu1 }
  0xb5 PF: > { %p9_p9 = scmp.ge.s32.totalorder %s447_s13, 4   ;;  %s488_s9 = smov %s409_s10 }
  0xb6   : > { %s489_s10 = smov %s456_s16  ;;  %s490_s11 = smov %s447_s13 }
  0xb7   :  { %11 = sbr.rel (!%p9_p9) target bundleno = 2 (0x2), region = 101 }

</bundles_post_ra>
